<compile_context>
chip_gen: v5e
topology: v5e:2x2
jax: 0.10.0
libtpu: 0.0.40
codegen_flags: <defaults>
</compile_context>

<pallas_src>
import jax
import jax.numpy as jnp
import numpy as np
from jax.experimental import pallas as pl
from jax.experimental.pallas import tpu as pltpu


def _posconv_kernel(x_ref, pos_ref, pb_ref, w_ref, b_ref, o_ref):
    # x_ref:   (Bt, Cin, TS)  Bt batch elements x one spatial tile (lane-dense)
    # pos_ref: (Cin, TS)      pos_h + pos_w for the same spatial tile
    # pb_ref:  (Cin, 1)       pre-activation bias
    # w_ref:   (Cout, Cin)    1x1 conv weight
    # b_ref:   (Cout, 1)      conv bias
    # o_ref:   (Bt, Cout, TS)
    pos = pos_ref[...].astype(jnp.float32)          # (Cin, TS)
    pb = pb_ref[...].astype(jnp.float32)            # (Cin, 1)
    w = w_ref[...]                                  # (Cout, Cin)
    bias = b_ref[...].astype(jnp.float32)           # (Cout, 1)

    bt = x_ref.shape[0]
    for i in range(bt):                             # small, trace-time unrolled
        x = x_ref[i].astype(jnp.float32) + pb       # (Cin, TS)
        x = x * jax.nn.sigmoid(x)                   # SiLU pre-activation
        x = x + pos
        # 1x1 conv == (Cout, Cin) @ (Cin, TS): one 2-D MXU matmul per batch,
        # operands in the weight dtype, f32 accumulate, lane-dense result.
        y = jnp.dot(w, x.astype(w.dtype), preferred_element_type=jnp.float32)
        y = y + bias
        y = y * jax.nn.sigmoid(y)                   # SiLU output activation
        o_ref[i] = y.astype(o_ref.dtype)


def _physical_vmem_bytes() -> int:
    """Generation-aware VMEM capacity (v5e/v6e: 128 MiB, v7x: 64 MiB per TC)."""
    try:
        return int(pltpu.get_tpu_info().vmem_capacity_bytes)
    except Exception:
        return 64 << 20     # conservative fallback (v7x per-TensorCore)


def _plan_tiling(B, Cin, Cout, HW, x_bytes, out_bytes, pos_bytes):
    """Pick (hw_pad, batch_block, spatial_tile, vmem_limit_bytes)."""
    hw_pad = ((HW + 127) // 128) * 128

    # Pack several batch elements per step when channels are tiny (Cin < 8
    # fills <8 sublanes per slab); reduces step count for small-HW cases.
    desired_bt = max(1, 8 // max(Cin, 1))
    bt = 1
    for d in range(1, min(B, desired_bt) + 1):
        if B % d == 0:
            bt = d

    physical = _physical_vmem_bytes()
    budget = int(0.45 * physical)        # headroom for compiler scratch etc.
    target_stream = 8 << 20              # ~8 MiB streamed (x+out) bytes / step

    def stream_bytes(ts):
        return bt * ts * (Cin * x_bytes + Cout * out_bytes)

    def footprint_bytes(ts):
        blocks = 2 * stream_bytes(ts)            # double-buffered x + out
        blocks += 2 * Cin * ts * pos_bytes       # double-buffered pos tile
        temps = 2 * bt * ts * (Cin + Cout) * 4   # f32 elementwise temporaries
        return blocks + temps + (1 << 20)        # small params + slack

    candidates = [ts for ts in range(128, hw_pad + 1, 128) if hw_pad % ts == 0]
    fitting = [ts for ts in candidates if footprint_bytes(ts) <= budget]
    if not fitting:
        ts = candidates[0]
    else:
        under = [t for t in fitting if stream_bytes(t) <= target_stream]
        ts = max(under) if under else min(fitting)

    vmem_limit = int(min(physical - (2 << 20),
                         max(2 * footprint_bytes(ts), 32 << 20)))
    return hw_pad, bt, ts, vmem_limit


def pos_conv(x_nchw, pos_h, pos_w, pre_act_bias, conv_w, conv_b):
    """Pallas PosConv (all layout work stays in NCHW; no HBM transposes).

    x_nchw:       (B, Cin, H, W)   — PyTorch layout
    pos_h:        (1, Cin, H, 1)
    pos_w:        (1, Cin, 1, W)
    pre_act_bias: (1, Cin, 1, 1)
    conv_w:       (Cout, Cin, 1, 1)
    conv_b:       (Cout,)
    returns       (B, Cout, H, W)
    """
    B, Cin, H, W = x_nchw.shape
    Cout = conv_w.shape[0]
    HW = H * W
    out_dtype = x_nchw.dtype

    # Layout-free reshape: collapse contiguous H, W dims.
    x_flat = x_nchw.reshape(B, Cin, HW)                      # (B, Cin, HW)

    # Tiny parameter prep (O(Cin*H*W), independent of batch).
    pos_sum = (pos_h + pos_w)[0].reshape(Cin, HW)            # (Cin, HW)
    pb = pre_act_bias[0, :, 0, 0].reshape(Cin, 1)            # (Cin, 1)
    wmat = conv_w[:, :, 0, 0]                                # (Cout, Cin)
    bvec = conv_b.reshape(Cout, 1)                           # (Cout, 1)

    hw_pad, bt, ts, vmem_limit = _plan_tiling(
        B, Cin, Cout, HW,
        x_bytes=x_flat.dtype.itemsize,
        out_bytes=jnp.dtype(out_dtype).itemsize,
        pos_bytes=pos_sum.dtype.itemsize,
    )

    # Pad spatial dim up to a multiple of 128 (padded tail is junk but finite;
    # it is sliced off below) so every tile stays lane-dense / unmasked.
    if hw_pad != HW:
        x_flat = jnp.pad(x_flat, ((0, 0), (0, 0), (0, hw_pad - HW)))
        pos_sum = jnp.pad(pos_sum, ((0, 0), (0, hw_pad - HW)))

    n_s = hw_pad // ts
    n_b = B // bt

    out_flat = pl.pallas_call(
        _posconv_kernel,
        out_shape=jax.ShapeDtypeStruct((B, Cout, hw_pad), out_dtype),
        grid_spec=pltpu.PrefetchScalarGridSpec(
            num_scalar_prefetch=0,
            # Spatial outermost, batch innermost: the pos tile's block index
            # (0, s) is constant across the inner b loop, so it is only DMA'd
            # n_s times total (not B*n_s).  Outer 'parallel' axis = n_s keeps
            # megacore sharding balanced on v7x for large images.
            grid=(n_s, n_b),
            in_specs=[
                pl.BlockSpec((bt, Cin, ts), lambda s, b: (b, 0, s)),   # x tile
                pl.BlockSpec((Cin, ts), lambda s, b: (0, s)),          # pos tile
                pl.BlockSpec((Cin, 1), lambda s, b: (0, 0)),           # pre-act bias
                pl.BlockSpec((Cout, Cin), lambda s, b: (0, 0)),        # weight
                pl.BlockSpec((Cout, 1), lambda s, b: (0, 0)),          # conv bias
            ],
            out_specs=pl.BlockSpec((bt, Cout, ts), lambda s, b: (b, 0, s)),
        ),
        compiler_params=pltpu.CompilerParams(
            dimension_semantics=("parallel", "parallel"),
            vmem_limit_bytes=vmem_limit,
        ),
    )(x_flat, pos_sum, pb, wmat, bvec)

    if hw_pad != HW:
        out_flat = out_flat[:, :, :HW]
    return out_flat.reshape(B, Cout, H, W)                   # layout-free reshape


def pos_conv_reference(x, pos_h, pos_w, pre_act_bias, conv_w, conv_b):
    """Pure-JAX NCHW reference matching the PyTorch module."""
    silu = lambda v: v * jax.nn.sigmoid(v)
    x = silu(x + pre_act_bias)
    x = x + pos_h + pos_w
    y = jnp.einsum("bchw,oc->bohw", x, conv_w[:, :, 0, 0]) + conv_b.reshape(1, -1, 1, 1)
    return silu(y)


if __name__ == "__main__":
    B, Cin, Cout, H, W = 2, 4, 8, 16, 16

    key = jax.random.PRNGKey(0)
    kx, kph, kpw, kpb, kw, kb = jax.random.split(key, 6)

    x = jax.random.normal(kx, (B, Cin, H, W), dtype=jnp.float32)

    # Parameters (module __init__ zero-inits pos embeddings / biases; we use small
    # deterministic random values so every kernel path is actually exercised).
    pos_h = 0.1 * jax.random.normal(kph, (1, Cin, H, 1), dtype=jnp.float32)
    pos_w = 0.1 * jax.random.normal(kpw, (1, Cin, 1, W), dtype=jnp.float32)
    pre_act_bias = 0.1 * jax.random.normal(kpb, (1, Cin, 1, 1), dtype=jnp.float32)
    # init_std(conv) ~ 1/sqrt(fan_in) for a 1x1 conv (fan_in = Cin)
    conv_w = (1.0 / np.sqrt(Cin)) * jax.random.normal(kw, (Cout, Cin, 1, 1), dtype=jnp.float32)
    conv_b = 0.05 * jax.random.normal(kb, (Cout,), dtype=jnp.float32)

    out = pos_conv(x, pos_h, pos_w, pre_act_bias, conv_w, conv_b)
    out = jax.block_until_ready(out)

    ref = pos_conv_reference(x, pos_h, pos_w, pre_act_bias, conv_w, conv_b)
    # Note: with bf16 weights the in-kernel matmul runs in bf16 (intentional,
    # MXU-rate) and tolerances would need to be relaxed; this test is f32.
    np.testing.assert_allclose(np.asarray(out), np.asarray(ref), rtol=1e-5, atol=1e-5)

    print("KERNEL_OK")
</pallas_src>

<mosaic_0001>
module attributes {stable_mosaic.version = 11 : i64} {
  func.func @_posconv_kernel(%arg0: i32, %arg1: i32, %arg2: memref<2x4x256xf32, #tpu.memory_space<vmem>>, %arg3: memref<4x256xf32, #tpu.memory_space<vmem>>, %arg4: memref<4x1xf32, #tpu.memory_space<vmem>>, %arg5: memref<8x4xf32, #tpu.memory_space<vmem>>, %arg6: memref<8x1xf32, #tpu.memory_space<vmem>>, %arg7: memref<2x8x256xf32, #tpu.memory_space<vmem>>) attributes {dimension_semantics = [#tpu.dimension_semantics<parallel>, #tpu.dimension_semantics<parallel>], iteration_bounds = array<i64: 1, 1>, scalar_prefetch = 0 : i64, scratch_operands = 0 : i64, tpu.core_type = #tpu.core_type<tc>, window_params = [{transform_indices = @transform_0, window_bounds = array<i64: 2, 4, 256>}, {transform_indices = @transform_1, window_bounds = array<i64: 4, 256>}, {pipeline_mode = #tpu.pipeline_mode<synchronous>, transform_indices = @transform_2, window_bounds = array<i64: 4, 1>}, {pipeline_mode = #tpu.pipeline_mode<synchronous>, transform_indices = @transform_3, window_bounds = array<i64: 8, 4>}, {pipeline_mode = #tpu.pipeline_mode<synchronous>, transform_indices = @transform_4, window_bounds = array<i64: 8, 1>}, {transform_indices = @transform_5, window_bounds = array<i64: 2, 8, 256>}]} {
    %c0 = arith.constant 0 : index
    %c0_0 = arith.constant 0 : index
    %0 = vector.load %arg3[%c0, %c0_0] : memref<4x256xf32, #tpu.memory_space<vmem>>, vector<4x256xf32>
    %c0_1 = arith.constant 0 : index
    %c0_2 = arith.constant 0 : index
    %1 = vector.load %arg4[%c0_1, %c0_2] : memref<4x1xf32, #tpu.memory_space<vmem>>, vector<4x1xf32>
    %c0_3 = arith.constant 0 : index
    %c0_4 = arith.constant 0 : index
    %2 = vector.load %arg5[%c0_3, %c0_4] : memref<8x4xf32, #tpu.memory_space<vmem>>, vector<8x4xf32>
    %c0_5 = arith.constant 0 : index
    %c0_6 = arith.constant 0 : index
    %3 = vector.load %arg6[%c0_5, %c0_6] : memref<8x1xf32, #tpu.memory_space<vmem>>, vector<8x1xf32>
    %c0_7 = arith.constant 0 : index
    %c0_8 = arith.constant 0 : index
    %c0_9 = arith.constant 0 : index
    %4 = vector.load %arg2[%c0_7, %c0_8, %c0_9] : memref<2x4x256xf32, #tpu.memory_space<vmem>>, vector<1x4x256xf32>
    %5 = vector.shape_cast %4 : vector<1x4x256xf32> to vector<4x256xf32>
    %6 = vector.broadcast %1 : vector<4x1xf32> to vector<4x256xf32>
    %7 = arith.addf %5, %6 : vector<4x256xf32>
    %8 = arith.negf %7 : vector<4x256xf32>
    %9 = math.exp %8 : vector<4x256xf32>
    %cst = arith.constant 1.000000e+00 : f32
    %10 = vector.broadcast %cst : f32 to vector<4x256xf32>
    %11 = arith.addf %10, %9 : vector<4x256xf32>
    %12 = arith.divf %10, %11 : vector<4x256xf32>
    %13 = arith.mulf %7, %12 : vector<4x256xf32>
    %14 = arith.addf %13, %0 : vector<4x256xf32>
    %cst_10 = arith.constant dense<0.000000e+00> : vector<8x256xf32>
    %15 = tpu.matmul %2, %14, %cst_10 {dimension_numbers = #tpu.dot_dimension_numbers<[1], [0], [0], [1], [0, 0, 1, 1], [], []>} : vector<8x4xf32>, vector<4x256xf32>, vector<8x256xf32> -> vector<8x256xf32>
    %16 = vector.broadcast %3 : vector<8x1xf32> to vector<8x256xf32>
    %17 = arith.addf %15, %16 : vector<8x256xf32>
    %18 = arith.negf %17 : vector<8x256xf32>
    %19 = math.exp %18 : vector<8x256xf32>
    %cst_11 = arith.constant 1.000000e+00 : f32
    %20 = vector.broadcast %cst_11 : f32 to vector<8x256xf32>
    %21 = arith.addf %20, %19 : vector<8x256xf32>
    %22 = arith.divf %20, %21 : vector<8x256xf32>
    %23 = arith.mulf %17, %22 : vector<8x256xf32>
    %c0_12 = arith.constant 0 : index
    %c0_13 = arith.constant 0 : index
    %c0_14 = arith.constant 0 : index
    %24 = vector.load %arg7[%c0_12, %c0_13, %c0_14] : memref<2x8x256xf32, #tpu.memory_space<vmem>>, vector<1x8x256xf32>
    %25 = vector.shape_cast %24 : vector<1x8x256xf32> to vector<8x256xf32>
    %26 = vector.shape_cast %23 : vector<8x256xf32> to vector<1x8x256xf32>
    tpu.vector_store %arg7[%c0_12, %c0_13, %c0_14], %26 {strides = array<i32>} : memref<2x8x256xf32, #tpu.memory_space<vmem>>, vector<1x8x256xf32>,
    %c1 = arith.constant 1 : index
    %c0_15 = arith.constant 0 : index
    %c0_16 = arith.constant 0 : index
    %27 = vector.load %arg2[%c1, %c0_15, %c0_16] : memref<2x4x256xf32, #tpu.memory_space<vmem>>, vector<1x4x256xf32>
    %28 = vector.shape_cast %27 : vector<1x4x256xf32> to vector<4x256xf32>
    %29 = vector.broadcast %1 : vector<4x1xf32> to vector<4x256xf32>
    %30 = arith.addf %28, %29 : vector<4x256xf32>
    %31 = arith.negf %30 : vector<4x256xf32>
    %32 = math.exp %31 : vector<4x256xf32>
    %cst_17 = arith.constant 1.000000e+00 : f32
    %33 = vector.broadcast %cst_17 : f32 to vector<4x256xf32>
    %34 = arith.addf %33, %32 : vector<4x256xf32>
    %35 = arith.divf %33, %34 : vector<4x256xf32>
    %36 = arith.mulf %30, %35 : vector<4x256xf32>
    %37 = arith.addf %36, %0 : vector<4x256xf32>
    %cst_18 = arith.constant dense<0.000000e+00> : vector<8x256xf32>
    %38 = tpu.matmul %2, %37, %cst_18 {dimension_numbers = #tpu.dot_dimension_numbers<[1], [0], [0], [1], [0, 0, 1, 1], [], []>} : vector<8x4xf32>, vector<4x256xf32>, vector<8x256xf32> -> vector<8x256xf32>
    %39 = vector.broadcast %3 : vector<8x1xf32> to vector<8x256xf32>
    %40 = arith.addf %38, %39 : vector<8x256xf32>
    %41 = arith.negf %40 : vector<8x256xf32>
    %42 = math.exp %41 : vector<8x256xf32>
    %cst_19 = arith.constant 1.000000e+00 : f32
    %43 = vector.broadcast %cst_19 : f32 to vector<8x256xf32>
    %44 = arith.addf %43, %42 : vector<8x256xf32>
    %45 = arith.divf %43, %44 : vector<8x256xf32>
    %46 = arith.mulf %40, %45 : vector<8x256xf32>
    %c1_20 = arith.constant 1 : index
    %c0_21 = arith.constant 0 : index
    %c0_22 = arith.constant 0 : index
    %47 = vector.load %arg7[%c1_20, %c0_21, %c0_22] : memref<2x8x256xf32, #tpu.memory_space<vmem>>, vector<1x8x256xf32>
    %48 = vector.shape_cast %47 : vector<1x8x256xf32> to vector<8x256xf32>
    %49 = vector.shape_cast %46 : vector<8x256xf32> to vector<1x8x256xf32>
    tpu.vector_store %arg7[%c1_20, %c0_21, %c0_22], %49 {strides = array<i32>} : memref<2x8x256xf32, #tpu.memory_space<vmem>>, vector<1x8x256xf32>,
    return
  }
  func.func @transform_0(%arg0: i32, %arg1: i32) -> (i32, i32, i32) {
    %c0_i32 = arith.constant 0 : i32
    %c0_i32_0 = arith.constant 0 : i32
    return %arg1, %c0_i32, %arg0 : i32, i32, i32
  }
  func.func @transform_1(%arg0: i32, %arg1: i32) -> (i32, i32) {
    %c0_i32 = arith.constant 0 : i32
    %c0_i32_0 = arith.constant 0 : i32
    return %c0_i32, %arg0 : i32, i32
  }
  func.func @transform_2(%arg0: i32, %arg1: i32) -> (i32, i32) {
    %c0_i32 = arith.constant 0 : i32
    %c0_i32_0 = arith.constant 0 : i32
    %c0_i32_1 = arith.constant 0 : i32
    return %c0_i32, %c0_i32_0 : i32, i32
  }
  func.func @transform_3(%arg0: i32, %arg1: i32) -> (i32, i32) {
    %c0_i32 = arith.constant 0 : i32
    %c0_i32_0 = arith.constant 0 : i32
    %c0_i32_1 = arith.constant 0 : i32
    return %c0_i32, %c0_i32_0 : i32, i32
  }
  func.func @transform_4(%arg0: i32, %arg1: i32) -> (i32, i32) {
    %c0_i32 = arith.constant 0 : i32
    %c0_i32_0 = arith.constant 0 : i32
    %c0_i32_1 = arith.constant 0 : i32
    return %c0_i32, %c0_i32_0 : i32, i32
  }
  func.func @transform_5(%arg0: i32, %arg1: i32) -> (i32, i32, i32) {
    %c0_i32 = arith.constant 0 : i32
    %c0_i32_0 = arith.constant 0 : i32
    return %arg1, %c0_i32, %arg0 : i32, i32, i32
  }
}

</mosaic_0001>

<bundles_post_ra>
// kernel: tpu_custom_call.1
= control target key start
LH: loop header
LB: loop body
LE: loop exit
PB: predicated region body
PF: predicated region fallthrough
CT: control target
= control target key end

     0   :  { %10 = vsyncpa [#allocation3], 0  ;;  %s468_s0 = inlined_call_operand.vmem [shape: f32[2,4,256], index: 0, kind: input, shape index: {}]   ;;  %s469_s1 = inlined_call_operand.hbm [shape: f32[4,256], index: 1, kind: input, shape index: {}]   ;;  %s470_s2 = inlined_call_operand.vmem [shape: f32[4,1], index: 2, kind: input, shape index: {}]   ;;  %s471_s3 = inlined_call_operand.vmem [shape: f32[8,4], index: 3, kind: input, shape index: {}]   ;;  %s472_s4 = inlined_call_operand.vmem [shape: f32[8,1], index: 4, kind: input, shape index: {}]   ;;  %s473_s5 = inlined_call_operand.hbm [shape: f32[2,8,256], index: 5, kind: output, shape index: {}]  }
   0x1   :  { %11 = vsyncpa [#allocation4], 0  ;;  %s19_s20 = sshll.u32 %s469_s1, 4  ;;  %s403_s21 = smov [#allocation2]   ;;  %s20_s20 = int_to_ptr.hbm [resolvable:$true] %s19_s20 }
   0x2   :  { %s21_s22 = sshll.u32 %s403_s21, 4  ;;  %s22_s22 = int_to_ptr.vmem [resolvable:$true] %s21_s22 }
   0x3   :  { %24 = dma.hbm_to_vmem [thread:$0]  %s20_s20, 128, %s22_s22, [#allocation3]  }
   0x4   :  { %399 = dma.done.wait [#allocation3], 128  }
   0x5   :  { %400 = vsyncadd [#allocation3], 4294967168  ;;  %v404_v0 = vmov 0   ;;  %v36_v1 = vld [vmem:[%s470_s2] sm:$0xf]  ;;  %v312_v7 = vld [vmem:[%s468_s0 + $0x8] sm:$0xff] }
   0x6   :  { %326 = vset.pattern.permute.xlu0 %v404_v0  ;;  %v38_v2 = vld [vmem:[%s472_s4] sm:$0xff]  ;;  %v405_v3 = vmov 839922192   ;;  %v35_v34 = vld [vmem:[#allocation2] sm:$0xff]  ;;  %vm84_vm8 = vcmask 1043456   ;;  %vm80_vm9 = vcmask 31744  }
   0x7   :  { %42 = vperm.xlu0 %326, %v36_v1   ;;  %v45_v4 = vunpack.c.l.s4 %v405_v3  ;;  %v39_v6 = vld [vmem:[%s468_s0] sm:$0xff]  ;;  %s292_s7 = sshll.u32 %s473_s5, 4  ;;  %s407_s8 = smov 256   ;;  %s293_s7 = int_to_ptr.hbm [resolvable:$true] %s292_s7 }
   0x8   :  { %v37_v43 = vld [vmem:[%s471_s3] sm:$0xff]  ;;  %s406_s3 = smov [#allocation5]   ;;  %s408_s9 = smov 16  }
   0x9   :  { %v46_v5 = vunpack.c.0.s8 %v45_v4  ;;  %s290_s4 = sshll.u32 %s406_s3, 4  ;;  %s291_s4 = int_to_ptr.vmem [resolvable:$true] %s290_s4 }
   0xf   :  { %73 = vperm.xlu0 %326, %v38_v2  }
  0x79   :  { %v43_v8 = vpop.permute.xlu0 %42 }
  0x7a   :  { %v47_v9 = vperm.slane %v43_v8, %v46_v5 }
  0x7c   :  { %v49_v10 = vadd.f32 %v47_v9, %v39_v6  ;;  %v173_v11 = vadd.f32 %v312_v7, %v47_v9 }
  0x7e   :  { %v305_v12 = vmul.f32 -1.442695, %v49_v10  ;;  %v313_v13 = vmul.f32 -1.442695, %v173_v11 }
  0x80   :  { %327 = vpow2.f32 %v305_v12 }
  0x81   :  { %329 = vpow2.f32 %v313_v13  ;;  %v74_v48 = vpop.permute.xlu0 %73 }
  0x86   :  { %v328_v14 = vpop.eup %327 }
  0x87   :  { %v330_v15 = vpop.eup %329  ;;  %v53_v16 = vadd.f32 1.0, %v328_v14 }
  0x88   :  { %v177_v17 = vadd.f32 1.0, %v330_v15 }
  0x89   :  { %331 = vrcp.f32 %v53_v16  ;;  %v65_v23 = vand.u32 2147483648, %v53_v16  ;;  %v63_v26 = vand.u32 2147483647, %v53_v16  ;;  %vm59_vm1 = vweird.f32 %v53_v16 }
  0x8a   :  { %333 = vrcp.f32 %v177_v17  ;;  %v189_v31 = vand.u32 2147483648, %v177_v17  ;;  %vm183_vm5 = vweird.f32 %v177_v17  ;;  %v187_v33 = vand.u32 2147483647, %v177_v17 }
  0x8b   :  { %v66_v29 = vor.u32 1.1754944e-38, %v65_v23  ;;  %vm64_vm4 = vcmp.eq.f32.partialorder %v63_v26, 8.507059e+37 }
  0x8c   :  { %v190_v38 = vor.u32 1.1754944e-38, %v189_v31  ;;  %vm188_vm7 = vcmp.eq.f32.partialorder %v187_v33, 8.507059e+37 }
  0x8f   :  { %v332_v18 = vpop.eup %331 }
  0x90   :  { %v334_v19 = vpop.eup %333  ;;  %v55_v20 = vmul.f32 %v332_v18, %v53_v16  ;;  %vm60_vm0 = vweird.f32 %v332_v18 }
  0x91   :  { %v179_v21 = vmul.f32 %v334_v19, %v177_v17  ;;  %vm184_vm2 = vweird.f32 %v334_v19  ;;  %vm61_vm3 = vmor %vm59_vm1, %vm60_vm0 }
  0x92   :  { %v56_v22 = vsub.f32 1.0, %v55_v20  ;;  %vm185_vm6 = vmor %vm183_vm5, %vm184_vm2 }
  0x93   :  { %v180_v24 = vsub.f32 1.0, %v179_v21 }
  0x94   :  { %v57_v25 = vmul.f32 %v332_v18, %v56_v22 }
  0x95   :  { %v181_v27 = vmul.f32 %v334_v19, %v180_v24 }
  0x96   :  { %v58_v28 = vadd.f32 %v332_v18, %v57_v25 }
  0x97   :  { %v182_v30 = vadd.f32 %v334_v19, %v181_v27 }
  0x98   :  { %v62_v32 = vsel %vm61_vm3, %v332_v18, %v58_v28 }
  0x99   :  { %v67_v35 = vsel %vm64_vm4, %v66_v29, %v62_v32  ;;  %v186_v37 = vsel %vm185_vm6, %v334_v19, %v182_v30 }
  0x9a   :  { %v69_v36 = vmul.f32 %v67_v35, %v49_v10  ;;  %v191_v40 = vsel %vm188_vm7, %v190_v38, %v186_v37 }
  0x9b   :  { %v193_v41 = vmul.f32 %v191_v40, %v173_v11 }
  0x9c   :  { %v70_v39 = vadd.f32 %v69_v36, %v35_v34 }
  0x9d   :  { %v194_v42 = vadd.f32 %v193_v41, %v35_v34 }
  0x9e   :  { %77 = vst [vmem:[#allocation1] ss:$2 sm:$0xff] %v70_v39 }
  0xa5   :  { %v78_v44 = vld.sshfl [vmem:[#allocation1] sm:$0xff pattern:$0x75316420]  ;;  %v79_v45 = vld.sshfl [vmem:[#allocation1 + $0x8] sm:$0xff pattern:$0x75316420] }
  0xa6   :  { %306 = vmatpush.msk.msra.mxu0 %vm84_vm8, %v78_v44  ;;  %308 = vmatpush.msk.msra.mxu1 %vm84_vm8, %v79_v45  ;;  %196 = vst [vmem:[#allocation1] ss:$2 sm:$0xff] %v194_v42 }
  0xa7   :  { %307 = vmatmul.msk.f32.vlgmr.msra.gmra.mxu0 %vm80_vm9, %v37_v43  ;;  %309 = vmatmul.msk.f32.vlgmr.msra.gmra.mxu1 %vm80_vm9, %v37_v43 }
  0xad   :  { %v197_v46 = vld.sshfl [vmem:[#allocation1] sm:$0xff pattern:$0x75316420]  ;;  %v198_v47 = vld.sshfl [vmem:[#allocation1 + $0x8] sm:$0xff pattern:$0x75316420] }
  0xae   :  { %314 = vmatpush.msk.msra.mxu2 %vm84_vm8, %v197_v46  ;;  %316 = vmatpush.msk.msra.mxu3 %vm84_vm8, %v198_v47 }
  0xaf   :  { %315 = vmatmul.msk.f32.vlgmr.msra.gmra.mxu2 %vm80_vm9, %v37_v43  ;;  %317 = vmatmul.msk.f32.vlgmr.msra.gmra.mxu3 %vm80_vm9, %v37_v43 }
 0x124   :  { %v106_v49 = vpop.f32.mrf.mxu0  ;;  %v126_v50 = vpop.f32.mrf.mxu1 }
 0x125   :  { %v107_v51 = vadd.f32 %v106_v49, %v74_v48  ;;  %v127_v52 = vadd.f32 %v126_v50, %v74_v48 }
 0x127   :  { %v310_v53 = vmul.f32 -1.442695, %v107_v51  ;;  %v311_v54 = vmul.f32 -1.442695, %v127_v52 }
 0x129   :  { %335 = vpow2.f32 %v310_v53 }
 0x12a   :  { %337 = vpow2.f32 %v311_v54 }
 0x12f   :  { %v336_v55 = vpop.eup %335 }
 0x130   :  { %v338_v56 = vpop.eup %337  ;;  %v135_v57 = vadd.f32 1.0, %v336_v55 }
 0x131   :  { %v136_v58 = vadd.f32 1.0, %v338_v56 }
 0x132   :  { %339 = vrcp.f32 %v135_v57  ;;  %v220_v59 = vpop.f32.mrf.mxu2  ;;  %v240_v60 = vpop.f32.mrf.mxu3  ;;  %v148_v6 = vand.u32 2147483648, %v135_v57  ;;  %v146_v9 = vand.u32 2147483647, %v135_v57  ;;  %vm142_vm12 = vweird.f32 %v135_v57 }
 0x133   :  { %341 = vrcp.f32 %v136_v58  ;;  %v457_v61 = vadd.f32 %v220_v59, %v74_v48  ;;  %v459_v62 = vadd.f32 %v240_v60, %v74_v48  ;;  %v163_v10 = vand.u32 2147483648, %v136_v58 }
 0x134   :  { %v161_v13 = vand.u32 2147483647, %v136_v58  ;;  %v149_v17 = vor.u32 1.1754944e-38, %v148_v6  ;;  %vm157_vm14 = vweird.f32 %v136_v58  ;;  %vm147_vm15 = vcmp.eq.f32.partialorder %v146_v9, 8.507059e+37 }
 0x135   :  { %v318_v63 = vmul.f32 -1.442695, %v457_v61  ;;  %v319_v0 = vmul.f32 -1.442695, %v459_v62  ;;  %v164_v21 = vor.u32 1.1754944e-38, %v163_v10 }
 0x136   :  { %vm162_vm1 = vcmp.eq.f32.partialorder %v161_v13, 8.507059e+37 }
 0x137   :  { %343 = vpow2.f32 %v318_v63 }
 0x138   :  { %v340_v1 = vpop.eup %339  ;;  %345 = vpow2.f32 %v319_v0 }
 0x139   :  { %v342_v2 = vpop.eup %341  ;;  %v138_v3 = vmul.f32 %v340_v1, %v135_v57  ;;  %vm143_vm10 = vweird.f32 %v340_v1 }
 0x13a   :  { %v153_v4 = vmul.f32 %v342_v2, %v136_v58  ;;  %vm158_vm11 = vweird.f32 %v342_v2  ;;  %vm144_vm13 = vmor %vm142_vm12, %vm143_vm10 }
 0x13b   :  { %v139_v5 = vsub.f32 1.0, %v138_v3  ;;  %vm159_vm0 = vmor %vm157_vm14, %vm158_vm11 }
 0x13c   :  { %v154_v7 = vsub.f32 1.0, %v153_v4 }
 0x13d   :  { %v140_v8 = vmul.f32 %v340_v1, %v139_v5  ;;  %v344_v11 = vpop.eup %343 }
 0x13e   :  { %v155_v12 = vmul.f32 %v342_v2, %v154_v7  ;;  %v346_v14 = vpop.eup %345  ;;  %v249_v16 = vadd.f32 1.0, %v344_v11 }
 0x13f   :  { %v141_v15 = vadd.f32 %v340_v1, %v140_v8  ;;  %v250_v19 = vadd.f32 1.0, %v346_v14 }
 0x140   :  { %v156_v18 = vadd.f32 %v342_v2, %v155_v12  ;;  %347 = vrcp.f32 %v249_v16  ;;  %v262_v32 = vand.u32 2147483648, %v249_v16  ;;  %v260_v35 = vand.u32 2147483647, %v249_v16 }
 0x141   :  { %v145_v20 = vsel %vm144_vm13, %v340_v1, %v141_v15  ;;  %349 = vrcp.f32 %v250_v19  ;;  %v277_v36 = vand.u32 2147483648, %v250_v19  ;;  %v275_v38 = vand.u32 2147483647, %v250_v19 }
 0x142   :  { %v150_v22 = vsel %vm147_vm15, %v149_v17, %v145_v20  ;;  %v160_v23 = vsel %vm159_vm0, %v342_v2, %v156_v18  ;;  %vm256_vm4 = vweird.f32 %v249_v16  ;;  %v263_v40 = vor.u32 1.1754944e-38, %v262_v32 }
 0x143   :  { %v167_v24 = vmul.f32 %v150_v22, %v107_v51  ;;  %v165_v25 = vsel %vm162_vm1, %v164_v21, %v160_v23  ;;  %vm271_vm6 = vweird.f32 %v250_v19  ;;  %vm261_vm7 = vcmp.eq.f32.partialorder %v260_v35, 8.507059e+37 }
 0x144   :  { %v168_v26 = vmul.f32 %v165_v25, %v127_v52  ;;  %v278_v43 = vor.u32 1.1754944e-38, %v277_v36  ;;  %vm276_vm9 = vcmp.eq.f32.partialorder %v275_v38, 8.507059e+37 }
 0x145   :  { %169 = vst [vmem:[#allocation5] sm:$0xff] %v167_v24 }
 0x146   :  { %170 = vst [vmem:[#allocation5 + $0x8] sm:$0xff] %v168_v26  ;;  %v348_v27 = vpop.eup %347 }
 0x147   :  { %v350_v28 = vpop.eup %349  ;;  %v252_v29 = vmul.f32 %v348_v27, %v249_v16  ;;  %vm257_vm2 = vweird.f32 %v348_v27 }
 0x148   :  { %v267_v30 = vmul.f32 %v350_v28, %v250_v19  ;;  %vm272_vm3 = vweird.f32 %v350_v28  ;;  %vm258_vm5 = vmor %vm256_vm4, %vm257_vm2 }
 0x149   :  { %v253_v31 = vsub.f32 1.0, %v252_v29  ;;  %vm273_vm8 = vmor %vm271_vm6, %vm272_vm3 }
 0x14a   :  { %v268_v33 = vsub.f32 1.0, %v267_v30 }
 0x14b   :  { %v254_v34 = vmul.f32 %v348_v27, %v253_v31 }
 0x14c   :  { %v269_v37 = vmul.f32 %v350_v28, %v268_v33 }
 0x14d   :  { %v255_v39 = vadd.f32 %v348_v27, %v254_v34 }
 0x14e   :  { %v270_v41 = vadd.f32 %v350_v28, %v269_v37 }
 0x14f   :  { %v259_v42 = vsel %vm258_vm5, %v348_v27, %v255_v39 }
 0x150   :  { %v264_v44 = vsel %vm261_vm7, %v263_v40, %v259_v42  ;;  %v274_v45 = vsel %vm273_vm8, %v350_v28, %v270_v41 }
 0x151   :  { %v281_v46 = vmul.f32 %v264_v44, %v457_v61  ;;  %v279_v47 = vsel %vm276_vm9, %v278_v43, %v274_v45 }
 0x152   :  { %v282_v48 = vmul.f32 %v279_v47, %v459_v62 }
 0x153   :  { %284 = vst [vmem:[#allocation5 + $0x10] sm:$0xff] %v281_v46 }
 0x154   :  { %285 = vst [vmem:[#allocation5 + $0x18] sm:$0xff] %v282_v48 }
 0x155   :  { %298 = dma.vmem_to_hbm [thread:$0]  %s291_s4, 512, %s293_s7, [#allocation4], %s407_s8, %s407_s8, %s408_s9  }
 0x156   :  { %401 = dma.done.wait [#allocation4], 512  }
 0x157   :  { %402 = vsyncadd [#allocation4], 4294966784 }
 0x158   :  { %303 = vsyncpa [#allocation3], 1 }
 0x159   :  { %304 = vsyncpa [#allocation4], 1 }

</bundles_post_ra>
